<compile_context>
chip_gen: v7x
topology: tpu7x:2x2x1
jax: 0.10.0
libtpu: 0.0.40
codegen_flags: <defaults>
</compile_context>

<pallas_src>
import functools
import math

import jax
import jax.numpy as jnp
from jax import lax
from jax.experimental import pallas as pl
from jax.experimental.pallas import tpu as pltpu


def _round_up(x, m):
    return (x + m - 1) // m * m


def _mlp_base_kernel(x_ref, w1_ref, w2_ref, b_ref, out_ref, *, hidden):
    x = x_ref[...]                       # (bm, num_inputs)
    b = b_ref[...]                       # (8, L); rows 0..3 used

    # layer 1, actor|critic fused:  h1 = [ha1 | hc1]  (bm, L)
    h1 = jnp.tanh(jnp.dot(x, w1_ref[...],
                          preferred_element_type=jnp.float32) + b[0:1, :])

    # layer 2, block-diagonal fused: h2 = [ha2 | hc2]  (bm, L)
    h2 = jnp.tanh(jnp.dot(h1, w2_ref[...],
                          preferred_element_type=jnp.float32) + b[1:2, :])

    # critic_linear as VPU mul + XLU lane reduce (row 2 of bias slab = wcl row,
    # zeros in the actor lanes).  No third MXU pass, no padded Wcl slab.
    val = jnp.sum(h2 * b[2:3, :], axis=-1, keepdims=True) + b[3:4, 0:1]

    # Splice the value column into lane `hidden` (first critic lane, which the
    # wrapper never reads as hidden state) -> one lane-dense unmasked store.
    bm, L = h2.shape
    lane = lax.broadcasted_iota(jnp.int32, (bm, L), 1)
    out_ref[...] = jnp.where(lane == hidden, val, h2)


def _pick_batch_tile(B, num_inputs, L):
    """Multiple-of-8 batch tile, VMEM-budgeted, with >= 2 grid steps when B >= 16."""
    if B < 16:
        return B                         # tiny batch: single full-extent block
    # x + fused output tiles, double-buffered, f32.
    bytes_per_row = (num_inputs + L) * 4 * 2
    budget = 8 * 1024 * 1024             # well under v7x's 32 MiB scoped default
    bm = min(512, max(8, budget // max(bytes_per_row, 1)))
    bm = min(bm, B // 2)                 # >= 2 grid steps -> both v7x TCs busy
    bm = max(8, (bm // 8) * 8)           # sublane-aligned
    return bm


def mlp_base_forward(inputs, rnn_hxs, masks, packed):
    """Pallas-backed forward of MLPBase (non-recurrent).

    inputs: (B, num_inputs) f32
    rnn_hxs: passthrough (recurrent=False)
    masks:   unused in the non-recurrent path
    packed:  dict from pack_mlp_base_params
    Returns (value (B, 1), hidden_actor (B, hidden), rnn_hxs).
    """
    del masks
    B, num_inputs = inputs.shape
    hidden = packed["hidden"]
    L = packed["w1"].shape[1]
    bm = _pick_batch_tile(B, num_inputs, L)
    grid = (pl.cdiv(B, bm),)             # ragged last tile is masked by Pallas

    cost = pl.CostEstimate(
        flops=2 * B * (num_inputs * L + L * L + L),
        transcendentals=2 * B * L,
        bytes_accessed=4 * (B * (num_inputs + L) + num_inputs * L + L * L + 8 * L),
    )

    out_slab = pl.pallas_call(
        functools.partial(_mlp_base_kernel, hidden=hidden),
        out_shape=jax.ShapeDtypeStruct((B, L), jnp.float32),
        grid=grid,
        in_specs=[
            pl.BlockSpec((bm, num_inputs), lambda i: (i, 0)),   # x tile
            pl.BlockSpec((num_inputs, L), lambda i: (0, 0)),    # fused W1 [Wa1|Wc1]
            pl.BlockSpec((L, L), lambda i: (0, 0)),             # block-diag W2
            pl.BlockSpec((8, L), lambda i: (0, 0)),             # bias/wcl slab
        ],
        out_specs=pl.BlockSpec((bm, L), lambda i: (i, 0)),      # [ha2 | value | hc2...]
        compiler_params=pltpu.CompilerParams(
            dimension_semantics=("parallel",)),
        cost_estimate=cost,
    )(inputs, packed["w1"], packed["w2"], packed["b"])

    hidden_actor = out_slab[:, :hidden]
    value = out_slab[:, hidden:hidden + 1]
    return value, hidden_actor, rnn_hxs


def init_mlp_base_params(key, num_inputs, hidden_size=64):
    """Mirror of the PyTorch module init: orthogonal_(gain=sqrt(2)) weights,
    zero biases.  Weights stored (in, out) (transposed vs. torch.nn.Linear)."""
    gain = math.sqrt(2.0)
    ortho = jax.nn.initializers.orthogonal(scale=gain)
    ks = jax.random.split(key, 5)

    def w(k, fan_in, fan_out):
        # torch orthogonal_ acts on (out, in); transpose to (in, out) layout.
        return ortho(k, (fan_out, fan_in), jnp.float32).T

    return {
        "aw1": w(ks[0], num_inputs, hidden_size),
        "ab1": jnp.zeros((1, hidden_size), jnp.float32),
        "aw2": w(ks[1], hidden_size, hidden_size),
        "ab2": jnp.zeros((1, hidden_size), jnp.float32),
        "cw1": w(ks[2], num_inputs, hidden_size),
        "cb1": jnp.zeros((1, hidden_size), jnp.float32),
        "cw2": w(ks[3], hidden_size, hidden_size),
        "cb2": jnp.zeros((1, hidden_size), jnp.float32),
        "clw": w(ks[4], hidden_size, 1),
        "clb": jnp.zeros((1, 1), jnp.float32),
    }


def pack_mlp_base_params(params, hidden_size=64):
    """Pack the 11 per-layer tensors into 3 lane-dense slabs (built once):
       w1 (num_inputs, L): [Wa1 | Wc1],  L = round_up(2*hidden, 128)
       w2 (L, L): block-diag [[Wa2, 0], [0, Wc2]]
       b  (8, L): row 0 = fused layer-1 biases, row 1 = fused layer-2 biases,
                  row 2 = critic_linear weights in lanes hidden:2*hidden,
                  row 3 lane 0 = critic_linear bias.
    Zero padding is exact: padded lanes stay exactly 0 through tanh/matmul."""
    h = hidden_size
    num_inputs = params["aw1"].shape[0]
    L = _round_up(2 * h, 128)

    w1 = jnp.zeros((num_inputs, L), jnp.float32)
    w1 = w1.at[:, :h].set(params["aw1"]).at[:, h:2 * h].set(params["cw1"])

    w2 = jnp.zeros((L, L), jnp.float32)
    w2 = w2.at[:h, :h].set(params["aw2"]).at[h:2 * h, h:2 * h].set(params["cw2"])

    b = jnp.zeros((8, L), jnp.float32)
    b = b.at[0, :h].set(params["ab1"][0]).at[0, h:2 * h].set(params["cb1"][0])
    b = b.at[1, :h].set(params["ab2"][0]).at[1, h:2 * h].set(params["cb2"][0])
    b = b.at[2, h:2 * h].set(params["clw"][:, 0])
    b = b.at[3, 0].set(params["clb"][0, 0])

    return {"w1": w1, "w2": w2, "b": b, "hidden": h}


def _reference_forward(inputs, rnn_hxs, masks, params):
    """Plain-JAX reference (unpacked params) for correctness check."""
    del masks
    x = inputs
    ha = jnp.tanh(x @ params["aw1"] + params["ab1"])
    ha = jnp.tanh(ha @ params["aw2"] + params["ab2"])
    hc = jnp.tanh(x @ params["cw1"] + params["cb1"])
    hc = jnp.tanh(hc @ params["cw2"] + params["cb2"])
    value = hc @ params["clw"] + params["clb"]
    return value, ha, rnn_hxs


if __name__ == "__main__":
    key = jax.random.PRNGKey(0)
    k_x, k_x2, k_p = jax.random.split(key, 3)

    NUM_INPUTS = 32
    HIDDEN = 64

    params = init_mlp_base_params(k_p, NUM_INPUTS, HIDDEN)
    packed = pack_mlp_base_params(params, HIDDEN)

    ok = True
    # case 1: tiny batch (single block path)
    # case 2: batch not divisible by the tile (ragged cdiv grid, >=2 steps)
    for kk, B in ((k_x, 2), (k_x2, 20)):
        inputs = jax.random.normal(kk, (B, NUM_INPUTS), dtype=jnp.float32)
        rnn_hxs = jnp.zeros((B, 1), jnp.float32)   # recurrent_hidden_state_size == 1
        masks = jnp.ones((B, 1), jnp.float32)

        value, hidden_actor, rnn_hxs_out = mlp_base_forward(
            inputs, rnn_hxs, masks, packed)
        jax.block_until_ready((value, hidden_actor, rnn_hxs_out))

        ref_value, ref_actor, _ = _reference_forward(inputs, rnn_hxs, masks, params)
        ok &= value.shape == (B, 1)
        ok &= hidden_actor.shape == (B, HIDDEN)
        ok &= bool(jnp.allclose(value, ref_value, atol=1e-5))
        ok &= bool(jnp.allclose(hidden_actor, ref_actor, atol=1e-5))

    assert ok
    print("KERNEL_OK")
</pallas_src>

<mosaic_0001>
module attributes {stable_mosaic.version = 11 : i64} {
  func.func @_mlp_base_kernel(%arg0: i32, %arg1: memref<2x32xf32, #tpu.memory_space<vmem>>, %arg2: memref<32x128xf32, #tpu.memory_space<vmem>>, %arg3: memref<128x128xf32, #tpu.memory_space<vmem>>, %arg4: memref<8x128xf32, #tpu.memory_space<vmem>>, %arg5: memref<2x128xf32, #tpu.memory_space<vmem>>) attributes {dimension_semantics = [#tpu.dimension_semantics<parallel>], iteration_bounds = array<i64: 1>, scalar_prefetch = 0 : i64, scratch_operands = 0 : i64, tpu.core_type = #tpu.core_type<tc>, window_params = [{transform_indices = @transform_0, window_bounds = array<i64: 2, 32>}, {pipeline_mode = #tpu.pipeline_mode<synchronous>, transform_indices = @transform_1, window_bounds = array<i64: 32, 128>}, {pipeline_mode = #tpu.pipeline_mode<synchronous>, transform_indices = @transform_2, window_bounds = array<i64: 128, 128>}, {pipeline_mode = #tpu.pipeline_mode<synchronous>, transform_indices = @transform_3, window_bounds = array<i64: 8, 128>}, {transform_indices = @transform_4, window_bounds = array<i64: 2, 128>}]} {
    %c0 = arith.constant 0 : index
    %c0_0 = arith.constant 0 : index
    %0 = vector.load %arg1[%c0, %c0_0] : memref<2x32xf32, #tpu.memory_space<vmem>>, vector<2x32xf32>
    %c0_1 = arith.constant 0 : index
    %c0_2 = arith.constant 0 : index
    %1 = vector.load %arg4[%c0_1, %c0_2] : memref<8x128xf32, #tpu.memory_space<vmem>>, vector<8x128xf32>
    %c0_3 = arith.constant 0 : index
    %c0_4 = arith.constant 0 : index
    %2 = vector.load %arg2[%c0_3, %c0_4] : memref<32x128xf32, #tpu.memory_space<vmem>>, vector<32x128xf32>
    %cst = arith.constant dense<0.000000e+00> : vector<2x128xf32>
    %3 = tpu.matmul %0, %2, %cst {dimension_numbers = #tpu.dot_dimension_numbers<[1], [0], [0], [1], [0, 0, 1, 1], [], []>} : vector<2x32xf32>, vector<32x128xf32>, vector<2x128xf32> -> vector<2x128xf32>
    %4 = vector.extract_strided_slice %1 {offsets = [0, 0], sizes = [1, 128], strides = [1, 1]} : vector<8x128xf32> to vector<1x128xf32>
    %5 = vector.broadcast %4 : vector<1x128xf32> to vector<2x128xf32>
    %6 = arith.addf %3, %5 : vector<2x128xf32>
    %7 = math.tanh %6 : vector<2x128xf32>
    %c0_5 = arith.constant 0 : index
    %c0_6 = arith.constant 0 : index
    %8 = vector.load %arg3[%c0_5, %c0_6] : memref<128x128xf32, #tpu.memory_space<vmem>>, vector<128x128xf32>
    %cst_7 = arith.constant dense<0.000000e+00> : vector<2x128xf32>
    %9 = tpu.matmul %7, %8, %cst_7 {dimension_numbers = #tpu.dot_dimension_numbers<[1], [0], [0], [1], [0, 0, 1, 1], [], []>} : vector<2x128xf32>, vector<128x128xf32>, vector<2x128xf32> -> vector<2x128xf32>
    %10 = vector.extract_strided_slice %1 {offsets = [1, 0], sizes = [1, 128], strides = [1, 1]} : vector<8x128xf32> to vector<1x128xf32>
    %11 = vector.broadcast %10 : vector<1x128xf32> to vector<2x128xf32>
    %12 = arith.addf %9, %11 : vector<2x128xf32>
    %13 = math.tanh %12 : vector<2x128xf32>
    %14 = vector.extract_strided_slice %1 {offsets = [2, 0], sizes = [1, 128], strides = [1, 1]} : vector<8x128xf32> to vector<1x128xf32>
    %15 = vector.broadcast %14 : vector<1x128xf32> to vector<2x128xf32>
    %16 = arith.mulf %13, %15 : vector<2x128xf32>
    %cst_8 = arith.constant dense<0.000000e+00> : vector<2xf32>
    %17 = vector.multi_reduction <add>, %16, %cst_8 [1] : vector<2x128xf32> to vector<2xf32>
    %18 = vector.shape_cast %17 : vector<2xf32> to vector<2x1xf32>
    %19 = vector.extract_strided_slice %1 {offsets = [3, 0], sizes = [1, 1], strides = [1, 1]} : vector<8x128xf32> to vector<1x1xf32>
    %20 = vector.broadcast %19 : vector<1x1xf32> to vector<2x1xf32>
    %21 = arith.addf %18, %20 : vector<2x1xf32>
    %22 = tpu.iota {dimensions = array<i32: 1>} : vector<2x128xi32>
    %c64_i32 = arith.constant 64 : i32
    %23 = vector.broadcast %c64_i32 : i32 to vector<2x128xi32>
    %24 = arith.cmpi eq, %22, %23 : vector<2x128xi32>
    %25 = vector.shape_cast %21 : vector<2x1xf32> to vector<2x1xf32>
    %26 = vector.broadcast %25 : vector<2x1xf32> to vector<2x128xf32>
    %27 = arith.select %24, %26, %13 : vector<2x128xi1>, vector<2x128xf32>
    %c0_9 = arith.constant 0 : index
    %c0_10 = arith.constant 0 : index
    %28 = vector.load %arg5[%c0_9, %c0_10] : memref<2x128xf32, #tpu.memory_space<vmem>>, vector<2x128xf32>
    tpu.vector_store %arg5[%c0_9, %c0_10], %27 {strides = array<i32>} : memref<2x128xf32, #tpu.memory_space<vmem>>, vector<2x128xf32>,
    return
  }
  func.func @transform_0(%arg0: i32) -> (i32, i32) {
    %c0_i32 = arith.constant 0 : i32
    %c0_i32_0 = arith.constant 0 : i32
    return %arg0, %c0_i32 : i32, i32
  }
  func.func @transform_1(%arg0: i32) -> (i32, i32) {
    %c0_i32 = arith.constant 0 : i32
    %c0_i32_0 = arith.constant 0 : i32
    %c0_i32_1 = arith.constant 0 : i32
    return %c0_i32, %c0_i32_0 : i32, i32
  }
  func.func @transform_2(%arg0: i32) -> (i32, i32) {
    %c0_i32 = arith.constant 0 : i32
    %c0_i32_0 = arith.constant 0 : i32
    %c0_i32_1 = arith.constant 0 : i32
    return %c0_i32, %c0_i32_0 : i32, i32
  }
  func.func @transform_3(%arg0: i32) -> (i32, i32) {
    %c0_i32 = arith.constant 0 : i32
    %c0_i32_0 = arith.constant 0 : i32
    %c0_i32_1 = arith.constant 0 : i32
    return %c0_i32, %c0_i32_0 : i32, i32
  }
  func.func @transform_4(%arg0: i32) -> (i32, i32) {
    %c0_i32 = arith.constant 0 : i32
    %c0_i32_0 = arith.constant 0 : i32
    return %arg0, %c0_i32 : i32, i32
  }
}

</mosaic_0001>

<bundles_post_ra>
// kernel: tpu_custom_call.1
= control target key start
LH: loop header
LB: loop body
LE: loop exit
PB: predicated region body
PF: predicated region fallthrough
CT: control target
= control target key end

     0   :  { %9 = vsyncpa [#allocation3], 0  ;;  %s573_s0 = inlined_call_operand.hbm [shape: f32[2,32], index: 0, kind: input, shape index: {}]   ;;  %s574_s1 = inlined_call_operand.hbm [shape: f32[32,128], index: 1, kind: input, shape index: {}]   ;;  %s575_s2 = inlined_call_operand.hbm [shape: f32[128,128], index: 2, kind: input, shape index: {}]   ;;  %s576_s3 = inlined_call_operand.vmem [shape: f32[8,128], index: 3, kind: input, shape index: {}]   ;;  %s577_s4 = inlined_call_operand.hbm [shape: f32[2,128], index: 4, kind: output, shape index: {}]  }
   0x1   :  { %10 = vsyncpa [#allocation6], 0 }
   0x2   :  { %11 = vsyncpa [#allocation4], 0  ;;  %s481_s15 = smov [#allocation5]   ;;  %s387_s19 = scalar_lea.hbm %s574_s1, 512 }
   0x3   :  { %s27_s16 = sshll.u32 %s481_s15, 4  ;;  %p388_p0 = scmp.ne.s32.totalorder %s574_s1, %s387_s19  ;;  %s28_s16 = int_to_ptr.vmem [resolvable:$true] %s27_s16 }
   0x4   :  { %p391_p1 = scmp.lt.u32.totalorder %s387_s19, %s574_s1 }
   0x6   :  { %p393_p2 = pnand %p391_p1, %p388_p0 }
   0x8   :  { %396 = shalt.err (!%p393_p2)
}
   0x9   :  { %s397_s24 = scalar_lea.vmem %s28_s16, 512  ;;  %p402_p4 = scmp.lt.s32.totalorder %s28_s16, %s28_s16 }
   0xa   :  { %p398_p3 = scmp.ne.s32.totalorder %s28_s16, %s397_s24  ;;  %p403_p5 = scmp.lt.s32.totalorder %s397_s24, %s397_s24 }
   0xc   :  { %p404_p6 = por %p403_p5, %p402_p4 }
   0xe   :  { %p405_p7 = pnand %p404_p6, %p398_p3 }
  0x10   :  { %408 = shalt.err (!%p405_p7)
}
  0x11   :  { %s482_s25 = smov 128   ;;  %s483_s26 = smov 8  }
  0x12   :  { %33 = dma.hbm_to_vmem [thread:$0]  %s574_s1, 512, %s28_s16, [#allocation6], %s482_s25, %s482_s25, %s483_s26  }
  0x13   :  { %s484_s29 = smov [#allocation2]   ;;  %s485_s5 = smov [#allocation7]  }
  0x14   :  { %s18_s30 = sshll.u32 %s484_s29, 4  ;;  %s39_s6 = sshll.u32 %s485_s5, 4  ;;  %s19_s30 = int_to_ptr.vmem [resolvable:$true] %s18_s30  ;;  %s40_s6 = int_to_ptr.vmem [resolvable:$true] %s39_s6 }
  0x15   :  { %s409_s9 = scalar_lea.hbm %s573_s0, 32 }
  0x16   :  { %p410_p8 = scmp.ne.s32.totalorder %s573_s0, %s409_s9  ;;  %p413_p9 = scmp.lt.u32.totalorder %s409_s9, %s573_s0 }
  0x18   :  { %p415_p10 = pnand %p413_p9, %p410_p8 }
  0x1a   :  { %418 = shalt.err (!%p415_p10)
}
  0x1b   :  { %s419_s1 = scalar_lea.vmem %s19_s30, 32  ;;  %p424_p12 = scmp.lt.s32.totalorder %s19_s30, %s19_s30 }
  0x1c   :  { %p420_p11 = scmp.ne.s32.totalorder %s19_s30, %s419_s1  ;;  %p425_p13 = scmp.lt.s32.totalorder %s419_s1, %s419_s1 }
  0x1e   :  { %p426_p0 = por %p425_p13, %p424_p12 }
  0x20   :  { %p427_p1 = pnand %p426_p0, %p420_p11 }
  0x22   :  { %430 = shalt.err (!%p427_p1)
}
  0x23   :  { %21 = dma.hbm_to_vmem [thread:$0]  %s573_s0, 32, %s19_s30, [#allocation3]  }
  0x24   :  { %s431_s18 = scalar_lea.hbm %s575_s2, 2048 }
  0x25   :  { %p432_p2 = scmp.ne.s32.totalorder %s575_s2, %s431_s18  ;;  %p435_p3 = scmp.lt.u32.totalorder %s431_s18, %s575_s2 }
  0x27   :  { %p437_p4 = pnand %p435_p3, %p432_p2 }
  0x29   :  { %440 = shalt.err (!%p437_p4)
}
  0x2a   :  { %s441_s23 = scalar_lea.vmem %s40_s6, 2048  ;;  %p446_p6 = scmp.lt.s32.totalorder %s40_s6, %s40_s6 }
  0x2b   :  { %p442_p5 = scmp.ne.s32.totalorder %s40_s6, %s441_s23  ;;  %p447_p7 = scmp.lt.s32.totalorder %s441_s23, %s441_s23 }
  0x2d   :  { %p448_p8 = por %p447_p7, %p446_p6 }
  0x2f   :  { %p449_p9 = pnand %p448_p8, %p442_p5 }
  0x31   :  { %452 = shalt.err (!%p449_p9)
}
  0x32   :  { %45 = dma.hbm_to_vmem [thread:$0]  %s575_s2, 2048, %s40_s6, [#allocation6], %s482_s25, %s482_s25, %s483_s26  }
  0x33   :  { %475 = dma.done.wait [#allocation3], 32  }
  0x34   :  { %476 = vsyncadd [#allocation3], 4294967264 }
  0x35   :  { %477 = dma.done.wait [#allocation6], 2560  }
  0x36   :  { %478 = vsyncadd [#allocation6], 4294964736  ;;  %v486_v0 = vmov 0.0|0.0   ;;  %vm487_vm0 = vmmov 0   ;;  %v488_v1 = vmov 0.0   ;;  %v59_v2 = vld [vmem:[#allocation5] sm:$0xff]  ;;  %v63_v33 = vlaneseq }
  0x37   :  { %342 = vmatprep.subr.bf16.mxu0 %v486_v0  ;;  %304 = vmatprep.mubr.msk.f32.mxu0 %vm487_vm0, %v488_v1  ;;  %v60_v3 = vld [vmem:[#allocation5 + $0x8] sm:$0xff]  ;;  %v61_v4 = vld [vmem:[#allocation5 + $0x10] sm:$0xff]  ;;  %v62_v6 = vld [vmem:[#allocation5 + $0x18] sm:$0xff]  ;;  %vm67_vm1 = vcmask 261120   ;;  %vm238_vm2 = vcmask 1041408   ;;  %v489_v52 = vmov 0  }
  0x38   :  { %348 = vmatprep.subr.bf16.mxu1 %v486_v0  ;;  %339 = vmatprep.mubr.msk.f32.mxu1 %vm487_vm0, %v488_v1  ;;  %v343_v5 = vpack.c.bf16 %v60_v3, %v59_v2  ;;  %v142_v7 = vld [vmem:[#allocation7] sm:$0xff]  ;;  %v143_v8 = vld [vmem:[#allocation7 + $0x8] sm:$0xff]  ;;  %v144_v9 = vld [vmem:[#allocation7 + $0x10] sm:$0xff]  ;;  %v346_v11 = vpack.c.bf16 %v62_v6, %v61_v4  ;;  %v64_v34 = vshrl.u32 %v63_v33, 7  ;;  %v248_v57 = vand.u32 127, %v63_v33 }
  0x39   :  { %v145_v10 = vld [vmem:[#allocation7 + $0x18] sm:$0xff]  ;;  %v349_v12 = vpack.c.bf16 %v143_v8, %v142_v7  ;;  %v146_v14 = vld [vmem:[#allocation7 + $0x20] sm:$0xff]  ;;  %v147_v15 = vld [vmem:[#allocation7 + $0x28] sm:$0xff]  ;;  %382 = vset.pattern.permute.xlu0 %v489_v52 }
  0x3a   :  { %344 = vmatpush3.bf16.msra.mxu0 %v343_v5  ;;  %v352_v13 = vpack.c.bf16 %v145_v10, %v144_v9  ;;  %v57_v16 = vld [vmem:[#allocation2] sm:$0x3]  ;;  %v355_v17 = vpack.c.bf16 %v147_v15, %v146_v14  ;;  %v148_v18 = vld [vmem:[#allocation7 + $0x30] sm:$0xff]  ;;  %v150_v21 = vld [vmem:[#allocation7 + $0x40] sm:$0xff]  ;;  %v65_v35 = vsub.s32 0, %v64_v34  ;;  %v160_v42 = vsub.s32 1, %v64_v34 }
  0x3b   :  { %345 = vmatprep.subr.bf16.mxu0 %v486_v0  ;;  %350 = vmatpush3.bf16.msra.mxu1 %v349_v12  ;;  %v149_v19 = vld [vmem:[#allocation7 + $0x38] sm:$0xff]  ;;  %v151_v22 = vld [vmem:[#allocation7 + $0x48] sm:$0xff]  ;;  %v152_v24 = vld [vmem:[#allocation7 + $0x50] sm:$0xff]  ;;  %v235_v47 = vsub.s32 2, %v64_v34  ;;  %v244_v53 = vsub.s32 3, %v64_v34  ;;  %vm249_vm3 = vcmp.eq.s32.totalorder %v248_v57, 64 }
  0x3c   :  { %351 = vmatprep.subr.bf16.mxu1 %v486_v0  ;;  %v358_v20 = vpack.c.bf16 %v149_v19, %v148_v18  ;;  %v361_v23 = vpack.c.bf16 %v151_v22, %v150_v21  ;;  %v153_v25 = vld [vmem:[#allocation7 + $0x58] sm:$0xff]  ;;  %v154_v27 = vld [vmem:[#allocation7 + $0x60] sm:$0xff]  ;;  %v155_v28 = vld [vmem:[#allocation7 + $0x68] sm:$0xff] }
  0x3d   :  { %v364_v26 = vpack.c.bf16 %v153_v25, %v152_v24  ;;  %v367_v29 = vpack.c.bf16 %v155_v28, %v154_v27  ;;  %v156_v30 = vld [vmem:[#allocation7 + $0x70] sm:$0xff]  ;;  %v157_v31 = vld [vmem:[#allocation7 + $0x78] sm:$0xff] }
  0x3e   :  { %347 = vmatpush3.bf16.msra.mxu0 %v346_v11  ;;  %v370_v32 = vpack.c.bf16 %v157_v31, %v156_v30  ;;  %v58_v36 = vld [vmem:[%s576_s3] sm:$0xff]  ;;  %s490_s3 = smov [#allocation8]  }
  0x3f   :  { %353 = vmatpush3.bf16.msra.mxu1 %v352_v13  ;;  %v66_v37 = vrot.slane %v58_v36, %v65_v35  ;;  %v161_v43 = vrot.slane %v58_v36, %v160_v42  ;;  %v236_v48 = vrot.slane %v58_v36, %v235_v47  ;;  %v245_v54 = vrot.slane %v58_v36, %v244_v53  ;;  %s263_s26 = sshll.u32 %s490_s3, 4  ;;  %s264_s26 = int_to_ptr.vmem [resolvable:$true] %s263_s26 }
  0x40   :  { %354 = vmatprep.subr.bf16.mxu1 %v486_v0  ;;  %s453_s27 = scalar_lea.vmem %s264_s26, 32  ;;  %p458_p11 = scmp.lt.s32.totalorder %s264_s26, %s264_s26 }
  0x41   :  { %305 = vmatmul.mubr.msk.f32.vlgmr.msra.gmra.mrb[0].mxu0 %vm67_vm1, %v57_v16  ;;  %p454_p10 = scmp.ne.s32.totalorder %s264_s26, %s453_s27  ;;  %p459_p12 = scmp.lt.s32.totalorder %s453_s27, %s453_s27 }
  0x43   :  { %356 = vmatpush3.bf16.msra.mxu1 %v355_v17  ;;  %p460_p13 = por %p459_p12, %p458_p11 }
  0x44   :  { %357 = vmatprep.subr.bf16.mxu1 %v486_v0 }
  0x45   :  { %p461_p0 = pnand %p460_p13, %p454_p10 }
  0x47   :  { %359 = vmatpush3.bf16.msra.mxu1 %v358_v20 }
  0x48   :  { %360 = vmatprep.subr.bf16.mxu1 %v486_v0 }
  0x4b   :  { %362 = vmatpush3.bf16.msra.mxu1 %v361_v23 }
  0x4c   :  { %363 = vmatprep.subr.bf16.mxu1 %v486_v0 }
  0x4f   :  { %365 = vmatpush3.bf16.msra.mxu1 %v364_v26 }
  0x50   :  { %366 = vmatprep.subr.bf16.mxu1 %v486_v0 }
  0x53   :  { %368 = vmatpush3.bf16.msra.mxu1 %v367_v29 }
  0x54   :  { %369 = vmatprep.subr.bf16.mxu1 %v486_v0 }
  0x57   :  { %371 = vmatpush3.bf16.msra.mxu1 %v370_v32 }
 0x114   :  { %v137_v38 = vpop.f32.mrb[0].mxu0 }
 0x115   :  { %v138_v39 = vadd.f32 %v137_v38, %v66_v37  ;;  %v306_v40 = vpop.f32.mrb[1].mxu0 }
 0x117   :  { %383 = vtanh.f32 %v138_v39 }
 0x121   :  { %v384_v41 = vpop.eup %383 }
 0x122   :  { %340 = vmatmul.mubr.f32.vlgmr.msra.gmra.mrb[0].mxu1 %v384_v41 }
 0x1f5   :  { %v228_v44 = vpop.f32.mrb[0].mxu1 }
 0x1f6   :  { %v229_v45 = vadd.f32 %v228_v44, %v161_v43  ;;  %v341_v46 = vpop.f32.mrb[1].mxu1 }
 0x1f8   :  { %385 = vtanh.f32 %v229_v45 }
 0x202   :  { %v386_v49 = vpop.eup %385 }
 0x203   :  { %v237_v50 = vmul.f32 %v386_v49, %v236_v48 }
 0x205   :  { %v239_v51 = vsel %vm238_vm2, %v237_v50, 0.0 }
 0x206   :  { %240 = vadd.xlane.f32.xlu0 %v239_v51 }
 0x293   :  { %v241_v55 = vpop.xlane.xlu0 %240 }
 0x294   :  { %v246_v56 = vadd.f32 %v245_v54, %v241_v55 }
 0x296   :  { %252 = vperm.xlu0 %382, %v246_v56  }
 0x315   :  { %v253_v58 = vpop.permute.xlu0 %252 }
 0x316   :  { %v255_v59 = vsel %vm249_vm3, %v253_v58, %v386_v49 }
 0x317   :  { %256 = vst [vmem:[#allocation8] sm:$0x3] %v255_v59 }
 0x318   :  { %464 = shalt.err (!%p461_p0)
}
 0x319   :  { %s465_s30 = scalar_lea.hbm %s577_s4, 32 }
 0x31a   :  { %p466_p1 = scmp.ne.s32.totalorder %s577_s4, %s465_s30  ;;  %p469_p2 = scmp.lt.u32.totalorder %s465_s30, %s577_s4 }
 0x31c   :  { %p471_p3 = pnand %p469_p2, %p466_p1 }
 0x31e   :  { %474 = shalt.err (!%p471_p3)
}
 0x31f   :  { %266 = dma.vmem_to_hbm [thread:$0]  %s264_s26, 32, %s577_s4, [#allocation4]  }
 0x320   :  { %479 = dma.done.wait [#allocation4], 32  }
 0x321   :  { %480 = vsyncadd [#allocation4], 4294967264 }
 0x322   :  { %270 = vsyncpa [#allocation3], 1 }
 0x323   :  { %271 = vsyncpa [#allocation6], 1 }
 0x324   :  { %272 = vsyncpa [#allocation4], 1 }

</bundles_post_ra>
